<compile_context>
chip_gen: v7x
topology: tpu7x:2x2x1
jax: 0.10.0
libtpu: 0.0.40
codegen_flags: <defaults>
</compile_context>

<pallas_src>
import jax
import jax.numpy as jnp
from jax.experimental import pallas as pl
from jax.experimental.pallas import tpu as pltpu


def _round_up(x, m):
    return ((x + m - 1) // m) * m


# -----------------------------------------------------------------------------
# Kernels
# -----------------------------------------------------------------------------
def _linear_kernel(x_ref, w_ref, o_ref):
    """Single-pass matmul: the whole reduction dim lives in one block."""
    # Cast the x tile to the MXU compute dtype (bf16) on the VPU — free filler
    # under the DMAs, and keeps x's HBM traffic to a single pass.
    x = x_ref[...].astype(w_ref.dtype)
    o_ref[...] = jnp.dot(
        x, w_ref[...], preferred_element_type=jnp.float32).astype(o_ref.dtype)


def _linear_acc_kernel(x_ref, w_ref, o_ref, acc_ref):
    """Fallback for very large D: reduction axis innermost, f32 accumulator."""
    k = pl.program_id(2)

    @pl.when(k == 0)
    def _():
        acc_ref[...] = jnp.zeros_like(acc_ref)

    x = x_ref[...].astype(w_ref.dtype)
    acc_ref[...] += jnp.dot(x, w_ref[...], preferred_element_type=jnp.float32)

    @pl.when(k == pl.num_programs(2) - 1)
    def _():
        o_ref[...] = acc_ref[...].astype(o_ref.dtype)


# -----------------------------------------------------------------------------
# Wrapper
# -----------------------------------------------------------------------------
_VMEM_BUDGET = 24 * 1024 * 1024   # tile-plan budget: fits v5e / v6e / v7x
_VMEM_LIMIT = 32 * 1024 * 1024    # explicit scoped-VMEM limit (raises v5e's 16 MiB)


def normalized_model_forward(x_nchw, mean_c, std_c, w, b,
                             *, compute_dtype=jnp.bfloat16):
    """out = Linear((x - mean[c]) / std[c]) computed by one Pallas matmul kernel."""
    N, C, H, W = x_nchw.shape
    D = C * H * W
    K = w.shape[1]
    assert w.shape[0] == D

    # ---- Fold the per-channel normalization into the Linear -----------------
    #   ((x - mean)/std) @ w + b == x @ (inv_std[:,None]*w) + (b - (mean*inv_std)@w)
    # TODO(synk): if the inner self.model did not start with an affine layer
    # (Linear/Conv), the fold would be invalid and the normalization would have
    # to stay in-kernel (normalize each K-tile on the VPU before the dot).
    inv_std_d = jnp.repeat(1.0 / std_c.astype(jnp.float32), H * W)         # (D,)
    mean_d = jnp.repeat(mean_c.astype(jnp.float32), H * W)                 # (D,)
    w32 = w.astype(jnp.float32)
    w_fold = w32 * inv_std_d[:, None]                                      # (D, K)
    b_fold = b.astype(jnp.float32) - (mean_d * inv_std_d) @ w32            # (K,)

    # ---- Layout: flatten x; pad only what the (8, 128) tiling really needs --
    x2d = x_nchw.reshape(N, D)
    x_itemsize = x2d.dtype.itemsize
    c_itemsize = jnp.dtype(compute_dtype).itemsize

    D_pad = _round_up(D, 128)
    K_pad = _round_up(K, 128)           # lane-dense output writeback

    if D_pad != D:
        x2d = jnp.pad(x2d, ((0, 0), (0, D_pad - D)))
        w_fold = jnp.pad(w_fold, ((0, D_pad - D), (0, 0)))
    if K_pad != K:
        w_fold = jnp.pad(w_fold, ((0, 0), (0, K_pad - K)))
    w_c = w_fold.astype(compute_dtype)  # folded weights emitted directly in bf16

    # Row tiling: small batches stay one un-padded block (block dim == full
    # array dim is legal); large batches use 128/256/512-row tiles with only
    # the tail rows zero-padded.
    M_pad = N
    if N <= 512:
        tm = N
    else:
        tm = 512 if N % 512 == 0 else (256 if N % 256 == 0 else 128)
        M_pad = _round_up(N, tm)
        if M_pad != N:
            x2d = jnp.pad(x2d, ((0, M_pad - N), (0, 0)))

    tn = K_pad if K_pad <= 512 else (256 if K_pad % 256 == 0 else 128)

    def vmem_footprint(tk):
        # double-buffered x (input dtype) + w (compute dtype) + out (f32)
        return 2 * (tm * tk * x_itemsize + tk * tn * c_itemsize + tm * tn * 4)

    out_shape = jax.ShapeDtypeStruct((M_pad, K_pad), jnp.float32)

    if vmem_footprint(D_pad) <= _VMEM_BUDGET:
        # ---- Common path: reduction collapsed into one block (tk == D_pad) --
        # Grid is (columns, rows) with rows innermost, so the weight block
        # index (0, j) is constant across the batch sweep -> w is DMA'd once
        # per column block and stays resident in VMEM.
        grid = (K_pad // tn, M_pad // tm)
        out_p = pl.pallas_call(
            _linear_kernel,
            out_shape=out_shape,
            grid_spec=pltpu.PrefetchScalarGridSpec(
                num_scalar_prefetch=0,
                grid=grid,
                in_specs=[
                    pl.BlockSpec((tm, D_pad), lambda j, i: (i, 0)),   # x
                    pl.BlockSpec((D_pad, tn), lambda j, i: (0, j)),   # w'
                ],
                out_specs=pl.BlockSpec((tm, tn), lambda j, i: (i, j)),
            ),
            compiler_params=pltpu.CompilerParams(
                dimension_semantics=("parallel", "parallel"),
                vmem_limit_bytes=_VMEM_LIMIT,
            ),
            cost_estimate=pl.CostEstimate(
                flops=2 * M_pad * D_pad * K_pad,
                transcendentals=0,
                bytes_accessed=(M_pad * D_pad * x_itemsize
                                + D_pad * K_pad * c_itemsize
                                + M_pad * K_pad * 4),
            ),
        )(x2d, w_c)
    else:
        # ---- Fallback for very large D: tiled reduction, f32 accumulator ----
        tk = 2048
        while tk > 128 and vmem_footprint(tk) > _VMEM_BUDGET:
            tk //= 2
        Dk = _round_up(D_pad, tk)
        if Dk != D_pad:
            x2d = jnp.pad(x2d, ((0, 0), (0, Dk - D_pad)))
            w_c = jnp.pad(w_c, ((0, Dk - D_pad), (0, 0)))
        grid = (M_pad // tm, K_pad // tn, Dk // tk)
        out_p = pl.pallas_call(
            _linear_acc_kernel,
            out_shape=out_shape,
            grid_spec=pltpu.PrefetchScalarGridSpec(
                num_scalar_prefetch=0,
                grid=grid,
                in_specs=[
                    pl.BlockSpec((tm, tk), lambda i, j, k: (i, k)),   # x
                    pl.BlockSpec((tk, tn), lambda i, j, k: (k, j)),   # w'
                ],
                out_specs=pl.BlockSpec((tm, tn), lambda i, j, k: (i, j)),
                scratch_shapes=[pltpu.VMEM((tm, tn), jnp.float32)],
            ),
            compiler_params=pltpu.CompilerParams(
                dimension_semantics=("parallel", "parallel", "arbitrary"),
                vmem_limit_bytes=_VMEM_LIMIT,
            ),
            cost_estimate=pl.CostEstimate(
                flops=2 * M_pad * Dk * K_pad,
                transcendentals=0,
                bytes_accessed=(M_pad * Dk * x_itemsize
                                + Dk * K_pad * c_itemsize
                                + M_pad * K_pad * 4),
            ),
        )(x2d, w_c)

    # Bias added once here (it was only needed on the final reduction step, so
    # streaming it through the kernel every grid step was wasted DMA work).
    return out_p[:N, :K] + b_fold


if __name__ == "__main__":
    key = jax.random.PRNGKey(0)
    k_x, k_w, k_b = jax.random.split(key, 3)

    N, C, H, W = 2, 4, 16, 16
    num_classes = 10

    x = jax.random.normal(k_x, (N, C, H, W), dtype=jnp.float32)

    # Deterministic per-channel normalization stats (CIFAR-like).
    mean = jnp.array([0.4914, 0.4822, 0.4465, 0.5000], dtype=jnp.float32)
    std = jnp.array([0.2470, 0.2435, 0.2616, 0.2500], dtype=jnp.float32)

    # Deterministic inner-model parameters (stand-in Linear for self.model).
    D = C * H * W
    w = jax.random.normal(k_w, (D, num_classes), dtype=jnp.float32) * 0.02
    b = jax.random.normal(k_b, (num_classes,), dtype=jnp.float32) * 0.01

    out = jax.jit(normalized_model_forward)(x, mean, std, w, b)
    jax.block_until_ready(out)

    # Reference (matches the PyTorch module's forward semantics, in f32).
    ref_norm = (x - mean.reshape(1, C, 1, 1)) / std.reshape(1, C, 1, 1)
    ref_out = ref_norm.reshape(N, D) @ w + b

    assert out.shape == (N, num_classes)
    err = float(jnp.max(jnp.abs(out - ref_out)))
    # bf16 MXU compute with f32 accumulation: tolerance loosened vs. the pure
    # f32 kernel (expected error ~1e-2 over a D=1024 reduction).
    assert err < 5e-2, err

    print("KERNEL_OK")
</pallas_src>

<mosaic_0001>
module attributes {stable_mosaic.version = 11 : i64} {
  func.func @_linear_kernel(%arg0: i32, %arg1: i32, %arg2: memref<2x1024xf32, #tpu.memory_space<vmem>>, %arg3: memref<1024x128xbf16, #tpu.memory_space<vmem>>, %arg4: memref<2x128xf32, #tpu.memory_space<vmem>>) attributes {dimension_semantics = [#tpu.dimension_semantics<parallel>, #tpu.dimension_semantics<parallel>], iteration_bounds = array<i64: 1, 1>, scalar_prefetch = 0 : i64, scratch_operands = 0 : i64, tpu.core_type = #tpu.core_type<tc>, window_params = [{transform_indices = @transform_0, window_bounds = array<i64: 2, 1024>}, {transform_indices = @transform_1, window_bounds = array<i64: 1024, 128>}, {transform_indices = @transform_2, window_bounds = array<i64: 2, 128>}]} {
    %c0 = arith.constant 0 : index
    %c0_0 = arith.constant 0 : index
    %0 = vector.load %arg2[%c0, %c0_0] : memref<2x1024xf32, #tpu.memory_space<vmem>>, vector<2x1024xf32>
    %1 = arith.truncf %0 : vector<2x1024xf32> to vector<2x1024xbf16>
    %c0_1 = arith.constant 0 : index
    %c0_2 = arith.constant 0 : index
    %2 = vector.load %arg3[%c0_1, %c0_2] : memref<1024x128xbf16, #tpu.memory_space<vmem>>, vector<1024x128xbf16>
    %cst = arith.constant dense<0.000000e+00> : vector<2x128xf32>
    %3 = tpu.matmul %1, %2, %cst {dimension_numbers = #tpu.dot_dimension_numbers<[1], [0], [0], [1], [0, 0, 1, 1], [], []>} : vector<2x1024xbf16>, vector<1024x128xbf16>, vector<2x128xf32> -> vector<2x128xf32>
    %c0_3 = arith.constant 0 : index
    %c0_4 = arith.constant 0 : index
    %4 = vector.load %arg4[%c0_3, %c0_4] : memref<2x128xf32, #tpu.memory_space<vmem>>, vector<2x128xf32>
    tpu.vector_store %arg4[%c0_3, %c0_4], %3 {strides = array<i32>} : memref<2x128xf32, #tpu.memory_space<vmem>>, vector<2x128xf32>,
    return
  }
  func.func @transform_0(%arg0: i32, %arg1: i32) -> (i32, i32) {
    %c0_i32 = arith.constant 0 : i32
    %c0_i32_0 = arith.constant 0 : i32
    return %arg1, %c0_i32 : i32, i32
  }
  func.func @transform_1(%arg0: i32, %arg1: i32) -> (i32, i32) {
    %c0_i32 = arith.constant 0 : i32
    %c0_i32_0 = arith.constant 0 : i32
    return %c0_i32, %arg0 : i32, i32
  }
  func.func @transform_2(%arg0: i32, %arg1: i32) -> (i32, i32) {
    %c0_i32 = arith.constant 0 : i32
    return %arg1, %arg0 : i32, i32
  }
}

</mosaic_0001>

<bundles_post_ra>
// kernel: mul.9
= control target key start
LH: loop header
LB: loop body
LE: loop exit
PB: predicated region body
PF: predicated region fallthrough
CT: control target
= control target key end

     0   :  { %s34_s0 = inlined_call_operand.vmem [shape: f32[1024], index: 0, kind: input, shape index: {}]   ;;  %s35_s1 = inlined_call_operand.vmem [shape: f32[1024], index: 1, kind: input, shape index: {}]   ;;  %s36_s2 = inlined_call_operand.vmem [shape: f32[1024], index: 2, kind: output, shape index: {}]  }
   0x1   :  { %v3_v0 = vld [vmem:[%s34_s0] sm:$0xff] }
   0x2   :  { %v4_v1 = vld [vmem:[%s35_s1] sm:$0xff] }
   0x3   :  { %v7_v2 = vmul.f32 %v4_v1, %v3_v0 }
   0x5   :  { %9 = vst [vmem:[%s36_s2] sm:$0xff] %v7_v2 }

// kernel: sub.1
= control target key start
LH: loop header
LB: loop body
LE: loop exit
PB: predicated region body
PF: predicated region fallthrough
CT: control target
= control target key end

     0   :  { %s34_s0 = inlined_call_operand.vmem [shape: f32[10], index: 0, kind: input, shape index: {}]   ;;  %s35_s1 = inlined_call_operand.vmem [shape: f32[10], index: 1, kind: input, shape index: {}]   ;;  %s36_s2 = inlined_call_operand.vmem [shape: f32[10], index: 2, kind: output, shape index: {}]  }
   0x1   :  { %v3_v0 = vld [vmem:[%s34_s0] sm:$0x1] }
   0x2   :  { %v4_v1 = vld [vmem:[%s35_s1] sm:$0x1] }
   0x3   :  { %v7_v2 = vsub.f32 %v3_v0, %v4_v1 }
   0x5   :  { %9 = vst [vmem:[%s36_s2] sm:$0x1] %v7_v2 }

// kernel: normalized_model_forward.1
= control target key start
LH: loop header
LB: loop body
LE: loop exit
PB: predicated region body
PF: predicated region fallthrough
CT: control target
= control target key end

     0   :  { %v962_v22 = vmov 1983009808   ;;  %v20_v24 = vlaneseq  ;;  %s1191_s1 = inlined_call_operand.vmem [shape: bf16[1024,128], index: 1, kind: input, shape index: {}]   ;;  %s1192_s0 = inlined_call_operand.vmem [shape: f32[2,1024], index: 0, kind: input, shape index: {}]   ;;  %s1193_s2 = inlined_call_operand.vmem [shape: f32[2,128], index: 2, kind: output, shape index: {}]  }
   0x1   :  { %v896_v0 = vld [vmem:[%s1191_s1 + $0x40] sm:$0xff]   ;;  %v900_v4 = vld [vmem:[%s1191_s1 + $0x48] sm:$0xff]   ;;  %v904_v8 = vld [vmem:[%s1191_s1 + $0x50] sm:$0xff]   ;;  %v18_v23 = vunpack.c.l.s4 %v962_v22 }
   0x2   :  { %v897_v1 = vld [vmem:[%s1191_s1 + $0xc0] sm:$0xff]   ;;  %807 = vmatprep.subr.bf16.mxu0 %v896_v0  ;;  %v901_v5 = vld [vmem:[%s1191_s1 + $0xc8] sm:$0xff]   ;;  %v905_v9 = vld [vmem:[%s1191_s1 + $0xd0] sm:$0xff]   ;;  %v21_v30 = vshrl.u32 %v20_v24, 7 }
   0x3   :  { %v898_v2 = vld [vmem:[%s1191_s1] sm:$0xff]   ;;  %829 = vmatprep.subr.bf16.mxu1 %v897_v1  ;;  %v902_v6 = vld [vmem:[%s1191_s1 + $0x8] sm:$0xff]   ;;  %v906_v10 = vld [vmem:[%s1191_s1 + $0x10] sm:$0xff]   ;;  %v19_v29 = vunpack.c.0.s8 %v18_v23 }
   0x4   :  { %v899_v3 = vld [vmem:[%s1191_s1 + $0x80] sm:$0xff]   ;;  %808 = vmatpush3.bf16.msra.mxu0 %v898_v2  ;;  %v903_v7 = vld [vmem:[%s1191_s1 + $0x88] sm:$0xff]   ;;  %v907_v11 = vld [vmem:[%s1191_s1 + $0x90] sm:$0xff]  }
   0x5   :  { %830 = vmatpush3.bf16.msra.mxu1 %v899_v3  ;;  %809 = vmatprep.subr.bf16.mxu0 %v900_v4  ;;  %v908_v12 = vld [vmem:[%s1191_s1 + $0x58] sm:$0xff]   ;;  %v912_v16 = vld [vmem:[%s1191_s1 + $0x60] sm:$0xff]   ;;  %v916_v20 = vld [vmem:[%s1191_s1 + $0x68] sm:$0xff]   ;;  %v22_v35 = vsub.s32 %v19_v29, %v21_v30 }
   0x6   :  { %831 = vmatprep.subr.bf16.mxu1 %v901_v5  ;;  %v909_v13 = vld [vmem:[%s1191_s1 + $0xd8] sm:$0xff]   ;;  %v913_v17 = vld [vmem:[%s1191_s1 + $0xe0] sm:$0xff]   ;;  %v917_v21 = vld [vmem:[%s1191_s1 + $0xe8] sm:$0xff]  }
   0x7   :  { %v910_v14 = vld [vmem:[%s1191_s1 + $0x18] sm:$0xff]   ;;  %v914_v18 = vld [vmem:[%s1191_s1 + $0x20] sm:$0xff]   ;;  %v918_v25 = vld [vmem:[%s1191_s1 + $0x28] sm:$0xff]  }
   0x8   :  { %810 = vmatpush3.bf16.msra.mxu0 %v902_v6  ;;  %v911_v15 = vld [vmem:[%s1191_s1 + $0x98] sm:$0xff]   ;;  %v915_v19 = vld [vmem:[%s1191_s1 + $0xa0] sm:$0xff]   ;;  %v919_v26 = vld [vmem:[%s1191_s1 + $0xa8] sm:$0xff]  }
   0x9   :  { %832 = vmatpush3.bf16.msra.mxu1 %v903_v7  ;;  %811 = vmatprep.subr.bf16.mxu0 %v904_v8  ;;  %v920_v27 = vld [vmem:[%s1191_s1 + $0x70] sm:$0xff]   ;;  %v924_v33 = vld [vmem:[%s1191_s1 + $0x78] sm:$0xff]   ;;  %v12_v38 = vld [vmem:[%s1192_s0] sm:$0xff] }
   0xa   :  { %833 = vmatprep.subr.bf16.mxu1 %v905_v9  ;;  %v921_v28 = vld [vmem:[%s1191_s1 + $0xf0] sm:$0xff]   ;;  %v925_v34 = vld [vmem:[%s1191_s1 + $0xf8] sm:$0xff]   ;;  %v13_v39 = vld [vmem:[%s1192_s0 + $0x8] sm:$0xff]  ;;  %v23_v40 = vrot.slane %v12_v38, %v22_v35  ;;  %v16_v42 = vcombine.high %v12_v38, %v12_v38 }
   0xb   :  { %v922_v31 = vld [vmem:[%s1191_s1 + $0x30] sm:$0xff]   ;;  %v926_v36 = vld [vmem:[%s1191_s1 + $0x38] sm:$0xff]   ;;  %v33_v41 = vcombine.high %v13_v39, %v13_v39  ;;  %v930_v43 = vld [vmem:[%s1191_s1 + $0x140] sm:$0xff]   ;;  %v1083_v44 = vrot.slane %v13_v39, %v22_v35 }
   0xc   :  { %812 = vmatpush3.bf16.msra.mxu0 %v906_v10  ;;  %v923_v32 = vld [vmem:[%s1191_s1 + $0xb0] sm:$0xff]   ;;  %v927_v37 = vld [vmem:[%s1191_s1 + $0xb8] sm:$0xff]   ;;  %v931_v45 = vld [vmem:[%s1191_s1 + $0x1c0] sm:$0xff]   ;;  %v31_v46 = vcombine.high %v23_v40, %v23_v40  ;;  %v30_v47 = vrot.slane %v16_v42, %v22_v35  ;;  %v58_v49 = vpack.c.bf16 %v23_v40, %v23_v40 }
   0xd   :  { %834 = vmatpush3.bf16.msra.mxu1 %v907_v11  ;;  %813 = vmatprep.subr.bf16.mxu0 %v908_v12  ;;  %v48_v48 = vcombine.high %v1083_v44, %v1083_v44  ;;  %v1090_v50 = vrot.slane %v33_v41, %v22_v35  ;;  %v932_v53 = vld [vmem:[%s1191_s1 + $0x100] sm:$0xff]   ;;  %v934_v55 = vld [vmem:[%s1191_s1 + $0x148] sm:$0xff]   ;;  %v938_v63 = vld [vmem:[%s1191_s1 + $0x150] sm:$0xff]   ;;  %v62_v24 = vpack.c.bf16 %v1083_v44, %v1083_v44 }
   0xe   :  { %835 = vmatprep.subr.bf16.mxu1 %v909_v13  ;;  %v59_v51 = vpack.c.bf16 %v31_v46, %v31_v46  ;;  %v32_v52 = vcombine.high %v30_v47, %v30_v47  ;;  %v60_v54 = vpack.c.bf16 %v30_v47, %v30_v47  ;;  %v933_v58 = vld [vmem:[%s1191_s1 + $0x180] sm:$0xff]   ;;  %v935_v60 = vld [vmem:[%s1191_s1 + $0x1c8] sm:$0xff]   ;;  %v939_v1 = vld [vmem:[%s1191_s1 + $0x1d0] sm:$0xff]  }
   0xf   :  { %v49_v56 = vcombine.high %v1090_v50, %v1090_v50  ;;  %v63_v59 = vpack.c.bf16 %v48_v48, %v48_v48  ;;  %v936_v62 = vld [vmem:[%s1191_s1 + $0x108] sm:$0xff]   ;;  %v940_v2 = vld [vmem:[%s1191_s1 + $0x110] sm:$0xff]   ;;  %v942_v3 = vld [vmem:[%s1191_s1 + $0x158] sm:$0xff]  }
  0x10   :  { %814 = vmatpush3.bf16.msra.mxu0 %v910_v14  ;;  %610 = vmatprep.mubr.bf16.mxu0 %v59_v51  ;;  %v61_v57 = vpack.c.bf16 %v32_v52, %v32_v52  ;;  %v937_v0 = vld [vmem:[%s1191_s1 + $0x188] sm:$0xff]   ;;  %v941_v4 = vld [vmem:[%s1191_s1 + $0x190] sm:$0xff]   ;;  %v943_v5 = vld [vmem:[%s1191_s1 + $0x1d8] sm:$0xff]  }
  0x11   :  { %836 = vmatpush3.bf16.msra.mxu1 %v911_v15  ;;  %815 = vmatprep.subr.bf16.mxu0 %v912_v16  ;;  %v65_v61 = vpack.c.bf16 %v49_v56, %v49_v56  ;;  %v944_v6 = vld [vmem:[%s1191_s1 + $0x118] sm:$0xff]   ;;  %v946_v7 = vld [vmem:[%s1191_s1 + $0x160] sm:$0xff]   ;;  %v950_v11 = vld [vmem:[%s1191_s1 + $0x168] sm:$0xff]  }
  0x12   :  { %837 = vmatprep.subr.bf16.mxu1 %v913_v17  ;;  %650 = vmatprep.mubr.bf16.mxu1 %v61_v57  ;;  %v945_v8 = vld [vmem:[%s1191_s1 + $0x198] sm:$0xff]   ;;  %v947_v9 = vld [vmem:[%s1191_s1 + $0x1e0] sm:$0xff]   ;;  %v951_v13 = vld [vmem:[%s1191_s1 + $0x1e8] sm:$0xff]  }
  0x13   :  { %v948_v10 = vld [vmem:[%s1191_s1 + $0x120] sm:$0xff]   ;;  %v952_v14 = vld [vmem:[%s1191_s1 + $0x128] sm:$0xff]   ;;  %v954_v15 = vld [vmem:[%s1191_s1 + $0x170] sm:$0xff]  }
  0x14   :  { %816 = vmatpush3.bf16.msra.mxu0 %v914_v18  ;;  %v949_v12 = vld [vmem:[%s1191_s1 + $0x1a0] sm:$0xff]   ;;  %v953_v16 = vld [vmem:[%s1191_s1 + $0x1a8] sm:$0xff]   ;;  %v955_v17 = vld [vmem:[%s1191_s1 + $0x1f0] sm:$0xff]  }
  0x15   :  { %838 = vmatpush3.bf16.msra.mxu1 %v915_v19  ;;  %817 = vmatprep.subr.bf16.mxu0 %v916_v20  ;;  %v956_v18 = vld [vmem:[%s1191_s1 + $0x130] sm:$0xff]   ;;  %v958_v19 = vld [vmem:[%s1191_s1 + $0x178] sm:$0xff]  }
  0x16   :  { %839 = vmatprep.subr.bf16.mxu1 %v917_v21  ;;  %v957_v20 = vld [vmem:[%s1191_s1 + $0x1b0] sm:$0xff]   ;;  %v959_v21 = vld [vmem:[%s1191_s1 + $0x1f8] sm:$0xff]  }
  0x17   :  { %v960_v22 = vld [vmem:[%s1191_s1 + $0x138] sm:$0xff]  }
  0x18   :  { %818 = vmatpush3.bf16.msra.mxu0 %v918_v25  ;;  %v961_v23 = vld [vmem:[%s1191_s1 + $0x1b8] sm:$0xff]   ;;  %v64_v25 = vpack.c.bf16 %v1090_v50, %v1090_v50 }
  0x19   :  { %840 = vmatpush3.bf16.msra.mxu1 %v919_v26  ;;  %819 = vmatprep.subr.bf16.mxu0 %v920_v27 }
  0x1a   :  { %841 = vmatprep.subr.bf16.mxu1 %v921_v28 }
  0x1c   :  { %820 = vmatpush3.bf16.msra.mxu0 %v922_v31 }
  0x1d   :  { %842 = vmatpush3.bf16.msra.mxu1 %v923_v32  ;;  %821 = vmatprep.subr.bf16.mxu0 %v924_v33 }
  0x1e   :  { %843 = vmatprep.subr.bf16.mxu1 %v925_v34 }
  0x20   :  { %822 = vmatpush3.bf16.msra.mxu0 %v926_v36 }
  0x21   :  { %844 = vmatpush3.bf16.msra.mxu1 %v927_v37  ;;  %851 = vmatprep.subr.bf16.mxu0 %v930_v43 }
  0x22   :  { %873 = vmatprep.subr.bf16.mxu1 %v931_v45 }
  0x23   :  { %611 = vmatmul.mubr.bf16.vlgmr.msra.gmra.mrb[0].mxu0 %v58_v49 }
  0x24   :  { %852 = vmatpush3.bf16.msra.mxu0 %v932_v53  ;;  %651 = vmatmul.mubr.bf16.vlgmr.msra.gmra.mrb[0].mxu1 %v60_v54 }
  0x25   :  { %853 = vmatprep.subr.bf16.mxu0 %v934_v55  ;;  %874 = vmatpush3.bf16.msra.mxu1 %v933_v58 }
  0x26   :  { %690 = vmatprep.mubr.bf16.mxu0 %v63_v59  ;;  %875 = vmatprep.subr.bf16.mxu1 %v935_v60 }
  0x27   :  { %730 = vmatprep.mubr.bf16.mxu1 %v65_v61 }
  0x28   :  { %854 = vmatpush3.bf16.msra.mxu0 %v936_v62 }
  0x29   :  { %855 = vmatprep.subr.bf16.mxu0 %v938_v63  ;;  %876 = vmatpush3.bf16.msra.mxu1 %v937_v0 }
  0x2a   :  { %877 = vmatprep.subr.bf16.mxu1 %v939_v1 }
  0x2c   :  { %856 = vmatpush3.bf16.msra.mxu0 %v940_v2 }
  0x2d   :  { %857 = vmatprep.subr.bf16.mxu0 %v942_v3  ;;  %878 = vmatpush3.bf16.msra.mxu1 %v941_v4 }
  0x2e   :  { %879 = vmatprep.subr.bf16.mxu1 %v943_v5 }
  0x30   :  { %858 = vmatpush3.bf16.msra.mxu0 %v944_v6 }
  0x31   :  { %859 = vmatprep.subr.bf16.mxu0 %v946_v7  ;;  %880 = vmatpush3.bf16.msra.mxu1 %v945_v8 }
  0x32   :  { %881 = vmatprep.subr.bf16.mxu1 %v947_v9 }
  0x34   :  { %860 = vmatpush3.bf16.msra.mxu0 %v948_v10 }
  0x35   :  { %861 = vmatprep.subr.bf16.mxu0 %v950_v11  ;;  %882 = vmatpush3.bf16.msra.mxu1 %v949_v12 }
  0x36   :  { %883 = vmatprep.subr.bf16.mxu1 %v951_v13 }
  0x38   :  { %862 = vmatpush3.bf16.msra.mxu0 %v952_v14 }
  0x39   :  { %863 = vmatprep.subr.bf16.mxu0 %v954_v15  ;;  %884 = vmatpush3.bf16.msra.mxu1 %v953_v16 }
  0x3a   :  { %885 = vmatprep.subr.bf16.mxu1 %v955_v17 }
  0x3c   :  { %864 = vmatpush3.bf16.msra.mxu0 %v956_v18 }
  0x3d   :  { %865 = vmatprep.subr.bf16.mxu0 %v958_v19  ;;  %886 = vmatpush3.bf16.msra.mxu1 %v957_v20 }
  0x3e   :  { %887 = vmatprep.subr.bf16.mxu1 %v959_v21 }
  0x40   :  { %866 = vmatpush3.bf16.msra.mxu0 %v960_v22 }
  0x41   :  { %888 = vmatpush3.bf16.msra.mxu1 %v961_v23 }
  0x43   :  { %691 = vmatmul.mubr.bf16.vlgmr.msra.gmra.mrb[4].mxu0 %v62_v24 }
  0x44   :  { %731 = vmatmul.mubr.bf16.vlgmr.msra.gmra.mrb[4].mxu1 %v64_v25 }
  0xf6   :  { %v823_v26 = vpop.f32.mrb[0].mxu0 }
  0xf7   :  { %v824_v27 = vpop.f32.mrb[1].mxu0  ;;  %v845_v28 = vpop.f32.mrb[0].mxu1 }
  0xf8   :  { %v825_v29 = vadd.f32 %v824_v27, %v823_v26  ;;  %v826_v30 = vpop.f32.mrb[2].mxu0  ;;  %v846_v31 = vpop.f32.mrb[1].mxu1 }
  0xf9   :  { %v827_v32 = vpop.f32.mrb[3].mxu0  ;;  %v847_v33 = vadd.f32 %v846_v31, %v845_v28  ;;  %v848_v34 = vpop.f32.mrb[2].mxu1 }
  0xfa   :  { %v849_v35 = vpop.f32.mrb[3].mxu1 }
  0xfb   :  { %v653_v36 = vadd.f32 %v847_v33, %v825_v29 }
 0x116   :  { %v867_v37 = vpop.f32.mrb[4].mxu0 }
 0x117   :  { %v868_v38 = vpop.f32.mrb[5].mxu0  ;;  %v889_v39 = vpop.f32.mrb[4].mxu1 }
 0x118   :  { %v869_v40 = vadd.f32 %v868_v38, %v867_v37  ;;  %v870_v41 = vpop.f32.mrb[6].mxu0  ;;  %v890_v42 = vpop.f32.mrb[5].mxu1 }
 0x119   :  { %v871_v43 = vpop.f32.mrb[7].mxu0  ;;  %v891_v45 = vadd.f32 %v890_v42, %v889_v39  ;;  %v892_v46 = vpop.f32.mrb[6].mxu1 }
 0x11a   :  { %v693_v44 = vadd.f32 %v869_v40, %v653_v36  ;;  %v893_v47 = vpop.f32.mrb[7].mxu1 }
 0x11c   :  { %v733_v48 = vadd.f32 %v891_v45, %v693_v44 }
 0x11e   :  { %738 = vst [vmem:[%s1193_s2] sm:$0x3] %v733_v48 }

</bundles_post_ra>
